<compile_context>
chip_gen: v5e
topology: v5e:2x2
jax: 0.10.0
libtpu: 0.0.40
codegen_flags: <defaults>
</compile_context>

<pallas_src>
import jax
import jax.numpy as jnp
from jax import lax
from jax.experimental import pallas as pl
from jax.experimental.pallas import tpu as pltpu

IGNORE_INDEX = -100
EPS = 1e-10
SMOOTH_WEIGHT = 0.5
LOSS_WEIGHT = 1.0

_VMEM_WORK_BUDGET = 24 << 20   # working-set budget used to pick the T tile
_VMEM_LIMIT_BYTES = 48 << 20   # safe on v7x's 64 MiB VMEM, plenty on v5e/v6e
_MAX_TILE_T = 2048             # >=512 lanes already reaches ~85% HBM roofline


def _make_kernel(T, tT, ragged, use_roll):
    """Build one (stage, T-tile) kernel specialized on static tiling facts."""

    def kernel(score_ref, labels_ref, masks_ref, ce_scale_ref, sm_scale_ref,
               out_ref, carry_ref):
        ti = pl.program_id(1)

        @pl.when(ti == 0)
        def _():
            out_ref[...] = jnp.zeros_like(out_ref)

        x = score_ref[...].astype(jnp.float32)      # (B, C, tT), native->f32
        labels = labels_ref[...]                    # (B, tT) int32
        masks = masks_ref[...]                      # (B, tT) f32
        B, C, _ = x.shape

        if ragged:
            # Frame-validity mask for the (possibly partial) last tile.
            # Out-of-range frames hold unspecified data; sanitize BEFORE any
            # exp/log so they contribute exactly 0 (and can never NaN).
            base = ti * tT
            lane2 = lax.broadcasted_iota(jnp.int32, (B, tT), 1)
            valid = (lane2 + base) < T              # (B, tT) bool
            x = jnp.where(valid[:, None, :], x, 0.0)
            masks = jnp.where(valid, masks, 0.0)

        # ---- log-softmax over the channel axis (sublane reduction) --------
        m = jnp.max(x, axis=1, keepdims=True)
        lse = jnp.log(jnp.sum(jnp.exp(x - m), axis=1, keepdims=True)) + m
        lp = x - lse                                # (B, C, tT)

        # ---- cross-entropy (reduction='none', ignore_index=-100) ----------
        # ignore_index never matches a class id, so ignored frames give 0.
        cls = lax.broadcasted_iota(jnp.int32, (B, C, tT), 1)
        ce = -jnp.sum(jnp.where(cls == labels[:, None, :], lp, 0.0), axis=1)
        if ragged:
            ce = jnp.where(valid, ce, 0.0)
        ce_partial = jnp.sum(jnp.sum(ce, axis=1, keepdims=True)
                             * ce_scale_ref[...])

        # ---- temporal smoothing: clamped MSE of adjacent log-softmax ------
        # prev[..., t] = lp[..., t-1]; lane 0 takes the carry column from the
        # previous tile (or lp[..., 0] itself at ti==0 so the seam diff is 0).
        prev_col = jnp.where(ti == 0, lp[:, :, :1], carry_ref[...])
        if use_roll:
            rolled = pltpu.roll(lp, shift=1, axis=2)    # XLU lane rotate
        else:
            # tiny / non-128-multiple tiles: fall back to slice+concat
            rolled = jnp.concatenate([lp[:, :, :1], lp[:, :, :-1]], axis=2)
        lane3 = lax.broadcasted_iota(jnp.int32, (B, C, tT), 2)
        prev = jnp.where(lane3 == 0, prev_col, rolled)
        d = lp - prev
        sq = jnp.minimum(d * d, 16.0)               # squares already >= 0
        sm_lane = jnp.sum(sq, axis=1)               # channel-sum first: (B,tT)
        sm_b = jnp.sum(sm_lane * masks, axis=1, keepdims=True)
        sm_partial = jnp.sum(sm_b * sm_scale_ref[...])

        carry_ref[...] = lp[:, :, tT - 1:tT]
        out_ref[...] += ce_partial + sm_partial

    return kernel


def _choose_tile_t(B, C, T, itemsize, max_tile_t=_MAX_TILE_T):
    """Largest lane-aligned T tile whose (sublane-padded) set fits the budget."""
    sub_in = 32 // itemsize                         # sublane pack of input dtype
    c_in = -(-C // sub_in) * sub_in                 # padded rows of score tile
    c_f32 = -(-C // 8) * 8                          # padded rows of f32 temps
    b_pad = -(-B // 8) * 8                          # labels/masks row padding
    per_frame = (2 * B * c_in * itemsize            # double-buffered score tile
                 + 8 * B * c_f32 * 4                # ~8 live f32 (B,Cp,tT) temps
                 + 2 * 2 * b_pad * 4)               # labels+masks, double-buffered
    max_tile_t = max(128, (max_tile_t // 128) * 128)
    max_t = max(128, (_VMEM_WORK_BUDGET // per_frame) // 128 * 128)
    max_t = min(max_t, max_tile_t)
    if T <= max_t:
        return T                                    # single tile per stage
    return max_t                                    # multiple of 128


def _compute_loss(scores, labels, masks, psn, *, smooth_weight=SMOOTH_WEIGHT,
                  eps=EPS, max_tile_t=_MAX_TILE_T):
    """Pallas-accelerated equivalent of SegmentationLossMultiLabel.compute_loss."""
    S, B, C, T = scores.shape
    labels = labels.astype(jnp.int32)
    masks = masks.astype(jnp.float32)
    psn = jnp.reshape(psn, (B,)).astype(jnp.float32)

    # Hoisted normalizations (identical for every stage / tile):
    inv_psn = 1.0 / (psn + eps)
    n_valid = jnp.sum((labels != IGNORE_INDEX).astype(jnp.float32))
    ce_scale = (inv_psn / (n_valid + eps)).reshape(B, 1)
    sm_scale = (inv_psn * (smooth_weight / (B * C * max(T - 1, 1)))).reshape(B, 1)

    tT = _choose_tile_t(B, C, T, jnp.dtype(scores.dtype).itemsize, max_tile_t)
    n_t = pl.cdiv(T, tT)
    ragged = (n_t * tT != T)        # partial last tile handled in-kernel
    use_roll = (tT % 128 == 0)      # lane-dense XLU roll path

    kernel = _make_kernel(T, tT, ragged, use_roll)

    out = pl.pallas_call(
        kernel,
        out_shape=jax.ShapeDtypeStruct((S, 1, 1), jnp.float32),
        grid=(S, n_t),
        in_specs=[
            pl.BlockSpec((None, B, C, tT), lambda s, t: (s, 0, 0, t)),  # scores
            pl.BlockSpec((B, tT), lambda s, t: (0, t)),                 # labels
            pl.BlockSpec((B, tT), lambda s, t: (0, t)),                 # masks
            pl.BlockSpec((B, 1), lambda s, t: (0, 0)),                  # ce_scale
            pl.BlockSpec((B, 1), lambda s, t: (0, 0)),                  # sm_scale
        ],
        out_specs=pl.BlockSpec((1, 1, 1), lambda s, t: (s, 0, 0)),
        scratch_shapes=[pltpu.VMEM((B, C, 1), jnp.float32)],            # carry
        compiler_params=pltpu.CompilerParams(
            dimension_semantics=("parallel", "arbitrary"),
            vmem_limit_bytes=_VMEM_LIMIT_BYTES),
    )(scores, labels, masks, ce_scale, sm_scale)
    return jnp.sum(out)


def segmentation_loss_multilabel(model_output, input_data, *,
                                 loss_weight=LOSS_WEIGHT,
                                 smooth_weight=SMOOTH_WEIGHT):
    """Forward pass of SegmentationLossMultiLabel."""
    action_loss = _compute_loss(model_output['action_score'],
                                input_data['labels'],
                                input_data['masks'],
                                input_data['precise_sliding_num'],
                                smooth_weight=smooth_weight)
    branch_loss = _compute_loss(model_output['branch_score'],
                                input_data['branch_labels'],
                                input_data['masks'],
                                input_data['precise_sliding_num'],
                                smooth_weight=smooth_weight)
    return {
        'action_loss': action_loss * loss_weight,
        'branch_loss': branch_loss * loss_weight,
        'loss': action_loss + branch_loss,
    }


# ---------------------------- pure-JAX reference ---------------------------
def _ref_compute_loss(scores, labels, masks, psn, *, smooth_weight=SMOOTH_WEIGHT,
                      eps=EPS):
    total = 0.0
    for p in scores:                               # p: (B, C, T)
        B, C, T = p.shape
        lp = jax.nn.log_softmax(p.astype(jnp.float32), axis=1)
        onehot = (labels[:, None, :] ==
                  jnp.arange(C, dtype=labels.dtype)[None, :, None]).astype(jnp.float32)
        ce = -jnp.sum(onehot * lp, axis=1)         # (B, T)
        n_valid = jnp.sum(labels != IGNORE_INDEX).astype(jnp.float32)
        total += jnp.sum(jnp.sum(ce, axis=-1) / (psn + eps)) / (n_valid + eps)
        diff = lp[:, :, 1:] - lp[:, :, :-1]
        sm = jnp.clip(diff * diff, 0.0, 16.0) * masks[:, None, 1:]
        sm = jnp.mean(jnp.mean(sm.reshape(B, -1), axis=-1) / (psn + eps))
        total += smooth_weight * sm
    return total


if __name__ == "__main__":
    key = jax.random.PRNGKey(0)
    k1, k2, k3, k4, k5, k6, k7, k8, k9, k10 = jax.random.split(key, 10)

    # ---------------- case 1: full module forward, small shapes -------------
    S, B, T = 2, 2, 16           # num stages, batch, time
    C_ACT, C_BR = 4, 6           # num_classes_action, num_classes_branches

    # action head in f32, branch head in bf16 (exercises the native-dtype path)
    action_score = jax.random.normal(k1, (S, B, C_ACT, T), dtype=jnp.float32)
    branch_score = jax.random.normal(k2, (S, B, C_BR, T),
                                     dtype=jnp.float32).astype(jnp.bfloat16)

    labels = jax.random.randint(k3, (B, T), 0, C_ACT, dtype=jnp.int32)
    labels = labels.at[0, :3].set(IGNORE_INDEX)            # some ignored frames
    branch_labels = jax.random.randint(k4, (B, T), 0, C_BR, dtype=jnp.int32)
    branch_labels = branch_labels.at[1, -2:].set(IGNORE_INDEX)

    masks = (jax.random.uniform(k5, (B, T)) > 0.2).astype(jnp.float32)
    precise_sliding_num = jax.random.uniform(k6, (B,), minval=1.0, maxval=3.0)

    model_output = {'action_score': action_score, 'branch_score': branch_score}
    input_data = {'labels': labels, 'branch_labels': branch_labels,
                  'masks': masks, 'precise_sliding_num': precise_sliding_num}

    loss_dict = segmentation_loss_multilabel(model_output, input_data)
    loss_dict = jax.block_until_ready(loss_dict)

    ref_action = _ref_compute_loss(action_score, labels, masks,
                                   precise_sliding_num)
    ref_branch = _ref_compute_loss(branch_score, branch_labels, masks,
                                   precise_sliding_num)
    assert jnp.allclose(loss_dict['action_loss'], ref_action * LOSS_WEIGHT,
                        rtol=1e-4, atol=1e-5)
    assert jnp.allclose(loss_dict['branch_loss'], ref_branch * LOSS_WEIGHT,
                        rtol=1e-4, atol=1e-5)
    assert jnp.allclose(loss_dict['loss'], ref_action + ref_branch,
                        rtol=1e-4, atol=1e-5)

    # ------- case 2: T-tiled path (carry across tiles, roll, ragged tail) ---
    S2, B2, C2, T2 = 2, 2, 4, 300          # 300 = 2*128 + 44 -> ragged last tile
    scores2 = jax.random.normal(k7, (S2, B2, C2, T2), dtype=jnp.float32)
    labels2 = jax.random.randint(k8, (B2, T2), 0, C2, dtype=jnp.int32)
    labels2 = labels2.at[0, 5:9].set(IGNORE_INDEX)
    masks2 = (jax.random.uniform(k9, (B2, T2)) > 0.3).astype(jnp.float32)
    psn2 = jax.random.uniform(k10, (B2,), minval=1.0, maxval=3.0)

    got2 = _compute_loss(scores2, labels2, masks2, psn2, max_tile_t=128)
    got2 = jax.block_until_ready(got2)
    ref2 = _ref_compute_loss(scores2, labels2, masks2, psn2)
    assert jnp.allclose(got2, ref2, rtol=1e-4, atol=1e-5)

    print("KERNEL_OK")
</pallas_src>

<mosaic_0001>
module attributes {stable_mosaic.version = 11 : i64} {
  func.func @kernel(%arg0: i32, %arg1: i32, %arg2: memref<1x2x4x16xf32, #tpu.memory_space<vmem>>, %arg3: memref<2x16xi32, #tpu.memory_space<vmem>>, %arg4: memref<2x16xf32, #tpu.memory_space<vmem>>, %arg5: memref<2x1xf32, #tpu.memory_space<vmem>>, %arg6: memref<2x1xf32, #tpu.memory_space<vmem>>, %arg7: memref<1x1x1xf32, #tpu.memory_space<vmem>>, %arg8: memref<2x4x1xf32, #tpu.memory_space<vmem>>) attributes {dimension_semantics = [#tpu.dimension_semantics<parallel>, #tpu.dimension_semantics<arbitrary>], iteration_bounds = array<i64: 2, 1>, scalar_prefetch = 0 : i64, scratch_operands = 1 : i64, tpu.core_type = #tpu.core_type<tc>, window_params = [{transform_indices = @transform_0, window_bounds = array<i64: 1, 2, 4, 16>}, {transform_indices = @transform_1, window_bounds = array<i64: 2, 16>}, {transform_indices = @transform_2, window_bounds = array<i64: 2, 16>}, {pipeline_mode = #tpu.pipeline_mode<synchronous>, transform_indices = @transform_3, window_bounds = array<i64: 2, 1>}, {pipeline_mode = #tpu.pipeline_mode<synchronous>, transform_indices = @transform_4, window_bounds = array<i64: 2, 1>}, {transform_indices = @transform_5, window_bounds = array<i64: 1, 1, 1>}]} {
    %c0_i32 = arith.constant 0 : i32
    %0 = arith.cmpi eq, %arg1, %c0_i32 : i32
    %1 = arith.extui %0 : i1 to i32
    %c0_i32_0 = arith.constant 0 : i32
    %2 = arith.cmpi ne, %1, %c0_i32_0 : i32
    scf.if %2 {
      %cst_36 = arith.constant 0.000000e+00 : f32
      %69 = vector.broadcast %cst_36 : f32 to vector<1x1x1xf32>
      %c0_37 = arith.constant 0 : index
      %c0_38 = arith.constant 0 : index
      %c0_39 = arith.constant 0 : index
      %70 = vector.load %arg7[%c0_37, %c0_38, %c0_39] : memref<1x1x1xf32, #tpu.memory_space<vmem>>, vector<1x1x1xf32>
      tpu.vector_store %arg7[%c0_37, %c0_38, %c0_39], %69 {strides = array<i32>} : memref<1x1x1xf32, #tpu.memory_space<vmem>>, vector<1x1x1xf32>,
    } else {
    }
    %c0 = arith.constant 0 : index
    %c0_1 = arith.constant 0 : index
    %c0_2 = arith.constant 0 : index
    %c0_3 = arith.constant 0 : index
    %3 = vector.load %arg2[%c0, %c0_1, %c0_2, %c0_3] : memref<1x2x4x16xf32, #tpu.memory_space<vmem>>, vector<1x2x4x16xf32>
    %4 = vector.shape_cast %3 : vector<1x2x4x16xf32> to vector<2x4x16xf32>
    %c0_4 = arith.constant 0 : index
    %c0_5 = arith.constant 0 : index
    %5 = vector.load %arg3[%c0_4, %c0_5] : memref<2x16xi32, #tpu.memory_space<vmem>>, vector<2x16xi32>
    %c0_6 = arith.constant 0 : index
    %c0_7 = arith.constant 0 : index
    %6 = vector.load %arg4[%c0_6, %c0_7] : memref<2x16xf32, #tpu.memory_space<vmem>>, vector<2x16xf32>
    %cst = arith.constant dense<0xFF800000> : vector<2x16xf32>
    %7 = vector.multi_reduction <maximumf>, %4, %cst [1] : vector<2x4x16xf32> to vector<2x16xf32>
    %8 = vector.shape_cast %7 : vector<2x16xf32> to vector<2x1x16xf32>
    %9 = vector.broadcast %8 : vector<2x1x16xf32> to vector<2x4x16xf32>
    %10 = arith.subf %4, %9 : vector<2x4x16xf32>
    %11 = math.exp %10 : vector<2x4x16xf32>
    %cst_8 = arith.constant dense<0.000000e+00> : vector<2x16xf32>
    %12 = vector.multi_reduction <add>, %11, %cst_8 [1] : vector<2x4x16xf32> to vector<2x16xf32>
    %13 = vector.shape_cast %12 : vector<2x16xf32> to vector<2x1x16xf32>
    %14 = math.log %13 : vector<2x1x16xf32>
    %15 = arith.addf %14, %8 : vector<2x1x16xf32>
    %16 = vector.broadcast %15 : vector<2x1x16xf32> to vector<2x4x16xf32>
    %17 = arith.subf %4, %16 : vector<2x4x16xf32>
    %18 = tpu.iota {dimensions = array<i32: 1>} : vector<2x4x16xi32>
    %19 = vector.shape_cast %5 : vector<2x16xi32> to vector<2x1x16xi32>
    %20 = vector.broadcast %19 : vector<2x1x16xi32> to vector<2x4x16xi32>
    %21 = arith.cmpi eq, %18, %20 : vector<2x4x16xi32>
    %cst_9 = arith.constant 0.000000e+00 : f32
    %22 = vector.broadcast %cst_9 : f32 to vector<2x4x16xf32>
    %23 = arith.select %21, %17, %22 : vector<2x4x16xi1>, vector<2x4x16xf32>
    %cst_10 = arith.constant dense<0.000000e+00> : vector<2x16xf32>
    %24 = vector.multi_reduction <add>, %23, %cst_10 [1] : vector<2x4x16xf32> to vector<2x16xf32>
    %cst_11 = arith.constant 0.000000e+00 : f32
    %25 = vector.broadcast %cst_11 : f32 to vector<2x16xf32>
    %26 = arith.subf %25, %24 : vector<2x16xf32>
    %cst_12 = arith.constant dense<0.000000e+00> : vector<2xf32>
    %27 = vector.multi_reduction <add>, %26, %cst_12 [1] : vector<2x16xf32> to vector<2xf32>
    %28 = vector.shape_cast %27 : vector<2xf32> to vector<2x1xf32>
    %c0_13 = arith.constant 0 : index
    %c0_14 = arith.constant 0 : index
    %29 = vector.load %arg5[%c0_13, %c0_14] : memref<2x1xf32, #tpu.memory_space<vmem>>, vector<2x1xf32>
    %30 = arith.mulf %28, %29 : vector<2x1xf32>
    %31 = vector.shape_cast %30 : vector<2x1xf32> to vector<1x2x1xf32>
    %cst_15 = arith.constant dense<0.000000e+00> : vector<1xf32>
    %32 = vector.multi_reduction <add>, %31, %cst_15 [1, 2] : vector<1x2x1xf32> to vector<1xf32>
    %33 = vector.shape_cast %32 : vector<1xf32> to vector<1x1x1xf32>
    %34 = vector.extract %33[0, 0, 0] : f32 from vector<1x1x1xf32>
    %c0_i32_16 = arith.constant 0 : i32
    %35 = arith.cmpi eq, %arg1, %c0_i32_16 : i32
    %36 = vector.extract_strided_slice %17 {offsets = [0, 0, 0], sizes = [2, 4, 1], strides = [1, 1, 1]} : vector<2x4x16xf32> to vector<2x4x1xf32>
    %c0_17 = arith.constant 0 : index
    %c0_18 = arith.constant 0 : index
    %c0_19 = arith.constant 0 : index
    %37 = vector.load %arg8[%c0_17, %c0_18, %c0_19] : memref<2x4x1xf32, #tpu.memory_space<vmem>>, vector<2x4x1xf32>
    %38 = arith.select %35, %36, %37 : vector<2x4x1xf32>
    %39 = vector.extract_strided_slice %17 {offsets = [0, 0, 0], sizes = [2, 4, 1], strides = [1, 1, 1]} : vector<2x4x16xf32> to vector<2x4x1xf32>
    %40 = vector.extract_strided_slice %17 {offsets = [0, 0, 0], sizes = [2, 4, 15], strides = [1, 1, 1]} : vector<2x4x16xf32> to vector<2x4x15xf32>
    %41 = tpu.concatenate %39, %40 in 2 : vector<2x4x1xf32>, vector<2x4x15xf32> -> vector<2x4x16xf32>
    %42 = tpu.iota {dimensions = array<i32: 2>} : vector<2x4x16xi32>
    %c0_i32_20 = arith.constant 0 : i32
    %43 = vector.broadcast %c0_i32_20 : i32 to vector<2x4x16xi32>
    %44 = arith.cmpi eq, %42, %43 : vector<2x4x16xi32>
    %45 = vector.shape_cast %38 : vector<2x4x1xf32> to vector<2x4x1xf32>
    %46 = vector.broadcast %45 : vector<2x4x1xf32> to vector<2x4x16xf32>
    %47 = arith.select %44, %46, %41 : vector<2x4x16xi1>, vector<2x4x16xf32>
    %48 = arith.subf %17, %47 : vector<2x4x16xf32>
    %49 = arith.mulf %48, %48 : vector<2x4x16xf32>
    %cst_21 = arith.constant 1.600000e+01 : f32
    %50 = vector.broadcast %cst_21 : f32 to vector<2x4x16xf32>
    %51 = arith.minimumf %49, %50 : vector<2x4x16xf32>
    %cst_22 = arith.constant dense<0.000000e+00> : vector<2x16xf32>
    %52 = vector.multi_reduction <add>, %51, %cst_22 [1] : vector<2x4x16xf32> to vector<2x16xf32>
    %53 = arith.mulf %52, %6 : vector<2x16xf32>
    %cst_23 = arith.constant dense<0.000000e+00> : vector<2xf32>
    %54 = vector.multi_reduction <add>, %53, %cst_23 [1] : vector<2x16xf32> to vector<2xf32>
    %55 = vector.shape_cast %54 : vector<2xf32> to vector<2x1xf32>
    %c0_24 = arith.constant 0 : index
    %c0_25 = arith.constant 0 : index
    %56 = vector.load %arg6[%c0_24, %c0_25] : memref<2x1xf32, #tpu.memory_space<vmem>>, vector<2x1xf32>
    %57 = arith.mulf %55, %56 : vector<2x1xf32>
    %58 = vector.shape_cast %57 : vector<2x1xf32> to vector<1x2x1xf32>
    %cst_26 = arith.constant dense<0.000000e+00> : vector<1xf32>
    %59 = vector.multi_reduction <add>, %58, %cst_26 [1, 2] : vector<1x2x1xf32> to vector<1xf32>
    %60 = vector.shape_cast %59 : vector<1xf32> to vector<1x1x1xf32>
    %61 = vector.extract %60[0, 0, 0] : f32 from vector<1x1x1xf32>
    %62 = vector.extract_strided_slice %17 {offsets = [0, 0, 15], sizes = [2, 4, 1], strides = [1, 1, 1]} : vector<2x4x16xf32> to vector<2x4x1xf32>
    %c0_27 = arith.constant 0 : index
    %c0_28 = arith.constant 0 : index
    %c0_29 = arith.constant 0 : index
    %63 = vector.load %arg8[%c0_27, %c0_28, %c0_29] : memref<2x4x1xf32, #tpu.memory_space<vmem>>, vector<2x4x1xf32>
    tpu.vector_store %arg8[%c0_27, %c0_28, %c0_29], %62 {strides = array<i32>} : memref<2x4x1xf32, #tpu.memory_space<vmem>>, vector<2x4x1xf32>,
    %c0_30 = arith.constant 0 : index
    %c0_31 = arith.constant 0 : index
    %c0_32 = arith.constant 0 : index
    %64 = vector.load %arg7[%c0_30, %c0_31, %c0_32] : memref<1x1x1xf32, #tpu.memory_space<vmem>>, vector<1x1x1xf32>
    %65 = arith.addf %34, %61 : f32
    %66 = vector.broadcast %65 : f32 to vector<1x1x1xf32>
    %67 = arith.addf %64, %66 : vector<1x1x1xf32>
    %c0_33 = arith.constant 0 : index
    %c0_34 = arith.constant 0 : index
    %c0_35 = arith.constant 0 : index
    %68 = vector.load %arg7[%c0_33, %c0_34, %c0_35] : memref<1x1x1xf32, #tpu.memory_space<vmem>>, vector<1x1x1xf32>
    tpu.vector_store %arg7[%c0_33, %c0_34, %c0_35], %67 {strides = array<i32>} : memref<1x1x1xf32, #tpu.memory_space<vmem>>, vector<1x1x1xf32>,
    return
  }
  func.func @transform_0(%arg0: i32, %arg1: i32) -> (i32, i32, i32, i32) {
    %c0_i32 = arith.constant 0 : i32
    %c0_i32_0 = arith.constant 0 : i32
    %c0_i32_1 = arith.constant 0 : i32
    return %arg0, %c0_i32, %c0_i32_0, %arg1 : i32, i32, i32, i32
  }
  func.func @transform_1(%arg0: i32, %arg1: i32) -> (i32, i32) {
    %c0_i32 = arith.constant 0 : i32
    %c0_i32_0 = arith.constant 0 : i32
    return %c0_i32, %arg1 : i32, i32
  }
  func.func @transform_2(%arg0: i32, %arg1: i32) -> (i32, i32) {
    %c0_i32 = arith.constant 0 : i32
    %c0_i32_0 = arith.constant 0 : i32
    return %c0_i32, %arg1 : i32, i32
  }
  func.func @transform_3(%arg0: i32, %arg1: i32) -> (i32, i32) {
    %c0_i32 = arith.constant 0 : i32
    %c0_i32_0 = arith.constant 0 : i32
    %c0_i32_1 = arith.constant 0 : i32
    return %c0_i32, %c0_i32_0 : i32, i32
  }
  func.func @transform_4(%arg0: i32, %arg1: i32) -> (i32, i32) {
    %c0_i32 = arith.constant 0 : i32
    %c0_i32_0 = arith.constant 0 : i32
    %c0_i32_1 = arith.constant 0 : i32
    return %c0_i32, %c0_i32_0 : i32, i32
  }
  func.func @transform_5(%arg0: i32, %arg1: i32) -> (i32, i32, i32) {
    %c0_i32 = arith.constant 0 : i32
    %c0_i32_0 = arith.constant 0 : i32
    %c0_i32_1 = arith.constant 0 : i32
    return %arg0, %c0_i32, %c0_i32_0 : i32, i32, i32
  }
}

</mosaic_0001>

<bundles_post_ra>
// kernel: tpu_custom_call.1
= control target key start
LH: loop header
LB: loop body
LE: loop exit
PB: predicated region body
PF: predicated region fallthrough
CT: control target
= control target key end

     0   :  { %10 = vsyncpa [#allocation4], 0  ;;  %s922_s0 = inlined_call_operand.hbm [shape: f32[2,2,4,16], index: 0, kind: input, shape index: {}]   ;;  %s923_s1 = inlined_call_operand.vmem [shape: s32[2,16], index: 1, kind: input, shape index: {}]   ;;  %s924_s2 = inlined_call_operand.vmem [shape: f32[2,16], index: 2, kind: input, shape index: {}]   ;;  %s925_s3 = inlined_call_operand.vmem [shape: f32[2,1], index: 3, kind: input, shape index: {}]   ;;  %s926_s4 = inlined_call_operand.vmem [shape: f32[2,1], index: 4, kind: input, shape index: {}]   ;;  %s927_s5 = inlined_call_operand.vmem [shape: f32[2,1,1], index: 5, kind: output, shape index: {}]  }
   0x1   :  { %12 = vsyncpa [#allocation4 + $0x1], 0  ;;  %s792_s18 = smov 0   ;;  %s794_s19 = smov 0  }
   0x2   :  { %s796_s20 = smov 0   ;;  %s798_s21 = smov 0  }
   0x3   :  { %s800_s22 = smov 0   ;;  %s802_s23 = smov 0  }
   0x4 LB: > { %s585_s24 = sadd.s32 4294967295, %s754_s23   ;;  %s30_s25 = sadd.s32 1, %s750_s22  ;;  %s754_s23 = sphi %s802_s23, %s18_s23   ;;  %s750_s22 = sphi %s800_s22, %s934_s22   ;;  %s746_s21 = sphi %s798_s21, %s933_s21   ;;  %s742_s20 = sphi %s796_s20, %s932_s20   ;;  %s738_s19 = sphi %s794_s19, %s931_s19   ;;  %s734_s18 = sphi %s792_s18, %s930_s18  }
   0x5   : > { %p32_p0 = scmp.ge.s32.totalorder %s30_s25, 2  ;;  %s39_s26 = sadd.s32 1, %s742_s20 }
   0x6   : > { %p46_p1 = scmp.ne.s32.totalorder %s742_s20, %s738_s19  ;;  %p47_p2 = scmp.eq.s32.totalorder %s754_s23, 0 }
   0x7   : > { %s936_s25 = smov (%p32_p0, %s30_s25), 0  ;;  %p52_p4 = scmp.ne.s32.totalorder %s738_s19, %s734_s18 }
   0x8   : > { %p828_p3 = por %p47_p2, %p46_p1  ;;  %s34_s28 = ssub.s32 %s750_s22, %s936_s25 }
   0x9   : > { %p53_p5 = scmp.eq.s32.totalorder %s585_s24, 0  ;;  %p37_p6 = scmp.eq.s32.totalorder %s34_s28, 0 }
   0xa   : > { %p609_p8 = scmp.lt.s32.totalorder %s754_s23, 2  ;;  %s216_s6 = sand.u32 1, %s742_s20  }
   0xb   : > { %p835_p7 = por %p53_p5, %p52_p4  ;;  %s598_s7 = sshll.u32 %s750_s22, 3 }
   0xc   : > { %s841_s30 = scalar_select %p37_p6, %s742_s20, %s39_s26  }
   0xd   : > { %s591_s8 = sshll.u32 %s216_s6, 3  ;;  %s226_s11 = scalar_lea.hbm %s922_s0, %s598_s7 }
   0xe   : > { %s227_s12 = sshll.u32 %s226_s11, 4  ;;  %s220_s13 = scalar_lea.vmem [#allocation3], %s591_s8  ;;  %s228_s12 = int_to_ptr.hbm [resolvable:$true] %s227_s12 }
   0xf   : > { %s229_s14 = sshll.u32 %s220_s13, 4  ;;  %p606_p9 = pnand %p609_p8, %p828_p3  ;;  %s230_s14 = int_to_ptr.vmem [resolvable:$true] %s229_s14 }
  0x10   : > { %p594_p10 = scmp.ge.s32.totalorder %s754_s23, 1  ;;  %p237_p11 = scmp.lt.s32.totalorder %s754_s23, 3 }
  0x11   : > { %s217_s15 = scalar_lea.sflag [#allocation4], %s216_s6  ;;  %s756_s16 = smov 64  }
  0x12   : > { %s757_s17 = smov 4   ;;  %p238_p12 = pnand %p594_p10, %p237_p11 }
  0x13   : > { %608 = dma.hbm_to_vmem [thread:$0]  (!%p606_p9), %s228_s12, 128, %s230_s14, %s217_s15, %s756_s16, %s756_s16, %s757_s17  }
  0x14   : > { %241 = sbr.rel (%p238_p12) target bundleno = 529 (0x211), region = 40  ;;  %s243_s18 = sand.u32 (!%p238_p12), 1, %s738_s19  }
  0x15   : > { %s595_s24 = sshll.u32 (!%p238_p12), %s243_s18, 3  ;;  %s244_s26 = scalar_lea.sflag (!%p238_p12), [#allocation4], %s243_s18 }
  0x16   : > { %s247_s28 = scalar_lea.vmem (!%p238_p12), [#allocation3], %s595_s24 }
  0x19   : > { %729 = dma.done.wait (%p835_p7), %s244_s26, 128  }
  0x1a   : > { %731 = vsyncadd (%p835_p7), %s244_s26, 4294967168  ;;  %vm302_vm0 = vcmask 125952   ;;  %v299_v0 = vld [vmem:[%s247_s28 + $0x4] sm:$0xf]  ;;  %v298_v1 = vld [vmem:[%s247_s28] sm:$0xf]  ;;  %v345_v46 = vlaneseq }
  0x1b   : > { %v310_v2 = vsel %vm302_vm0, %v299_v0, -inf  ;;  %v303_v3 = vsel %vm302_vm0, %v298_v1, -inf  ;;  %v758_v20 = vmov 0   ;;  %s759_s27 = smov 1   ;;  %v300_v45 = vld [vmem:[%s923_s1] sm:$0x3] }
  0x1c   : > { %v311_v4 = vrot.slane %v310_v2, 4  ;;  %v304_v5 = vrot.slane %v303_v3, 4  ;;  %665 = vset.pattern.permute.xlu1 %v758_v20  ;;  %664 = vset.pattern.permute.xlu0 %v758_v20  ;;  %v347_v47 = vrot.slane %v300_v45, 1  ;;  %v346_v48 = vshrl.u32 %v345_v46, 7  ;;  %s760_s9 = smov 113   ;;  %p289_p13 = scmp.lt.s32.totalorder %s746_s21, 1 }
  0x1d   : > { %v348_v49 = vperm.slane %v300_v45, 0  ;;  %vm372_vm3 = vcmask 1041409   ;;  %vm375_vm4 = vcmask 123904   ;;  %vm407_vm5 = vcmask 7168   ;;  %v379_v45 = vld [vmem:[%s925_s3] sm:$0x3] }
  0x1e   : > { %v312_v6 = vmax.f32 %v310_v2, %v311_v4  ;;  %v305_v7 = vmax.f32 %v303_v3, %v304_v5  ;;  %v349_v50 = vperm.slane %v347_v47, 0  ;;  %vm381_vm7 = vcmask 1024   ;;  %s938_s21 = smov (!%p289_p13, %s746_s21), 1 }
  0x1f   : > { %vm350_vm1 = vcmp.eq.s32.totalorder %v346_v48, %v348_v49  ;;  %s291_s16 = scalar_lea.vmem %s927_s5, %s938_s21  ;;  %vm296_vm8 = vcmask 0  }
  0x20   : > { %v313_v8 = vrot.slane %v312_v6, 2  ;;  %v306_v9 = vrot.slane %v305_v7, 2  ;;  %vm351_vm2 = vcmp.eq.s32.totalorder %v346_v48, %v349_v50 }
  0x22   : > { %v314_v10 = vmax.f32 %v312_v6, %v313_v8  ;;  %v307_v11 = vmax.f32 %v305_v7, %v306_v9  ;;  %v411_v9 = vand.u32 127, %v345_v46 }
  0x24   : > { %v315_v12 = vrot.slane %v314_v10, 1  ;;  %v308_v13 = vrot.slane %v307_v11, 1  ;;  %vm412_vm6 = vcmp.eq.s32.totalorder %v411_v9, 0 }
  0x26   : > { %v316_v14 = vmax.f32 %v314_v10, %v315_v12  ;;  %v309_v15 = vmax.f32 %v307_v11, %v308_v13 }
  0x28   : > { %v318_v16 = vsub.f32 %v299_v0, %v316_v14  ;;  %v317_v17 = vsub.f32 %v298_v1, %v309_v15 }
  0x2a   : > { %v321_v18 = vmul.f32 1.442695, %v318_v16  ;;  %v319_v19 = vmul.f32 1.442695, %v317_v17 }
  0x2c   : > { %666 = vpow2.f32 %v321_v18 }
  0x2d   : > { %668 = vpow2.f32 %v319_v19 }
  0x32   : > { %v667_v21 = vpop.eup %666 }
  0x33   : > { %v669_v22 = vpop.eup %668  ;;  %v330_v23 = vsel %vm302_vm0, %v667_v21, 0.0 }
  0x34   : > { %v331_v24 = vrot.slane %v330_v23, 4  ;;  %v323_v25 = vsel %vm302_vm0, %v669_v22, 0.0 }
  0x35   : > { %v324_v26 = vrot.slane %v323_v25, 4 }
  0x36   : > { %v332_v27 = vadd.f32 %v331_v24, %v330_v23 }
  0x37   : > { %v325_v28 = vadd.f32 %v324_v26, %v323_v25 }
  0x38   : > { %v333_v29 = vrot.slane %v332_v27, 2 }
  0x39   : > { %v326_v30 = vrot.slane %v325_v28, 2 }
  0x3a   : > { %v334_v31 = vadd.f32 %v333_v29, %v332_v27 }
  0x3b   : > { %v327_v32 = vadd.f32 %v326_v30, %v325_v28  ;;  %v301_v30 = vld [vmem:[%s924_s2] sm:$0x3] }
  0x3c   : > { %v335_v33 = vrot.slane %v334_v31, 1 }
  0x3d   : > { %v328_v34 = vrot.slane %v327_v32, 1 }
  0x3e   : > { %v336_v35 = vadd.f32 %v335_v33, %v334_v31 }
  0x3f   : > { %v329_v36 = vadd.f32 %v328_v34, %v327_v32  ;;  %v446_v34 = vrot.slane %v301_v30, 1 }
  0x40   : > { %670 = vlog2.f32 %v336_v35 }
  0x41   : > { %672 = vlog2.f32 %v329_v36 }
  0x46   : > { %v671_v37 = vpop.eup %670 }
  0x47   : > { %v673_v38 = vpop.eup %672  ;;  %v340_v39 = vmul.f32 0.6931472, %v671_v37 }
  0x48   : > { %v338_v40 = vmul.f32 0.6931472, %v673_v38 }
  0x49   : > { %v342_v41 = vadd.f32 %v340_v39, %v316_v14 }
  0x4a   : > { %v341_v42 = vadd.f32 %v338_v40, %v309_v15 }
  0x4b   : > { %v861_v43 = vsub.f32 %v299_v0, %v342_v41 }
  0x4c   : > { %v863_v44 = vsub.f32 %v298_v1, %v341_v42 }
  0x4d   : > { %403 = vrot.lane.b32.xlu0 %v861_v43, %s759_s27  ;;  %v353_v52 = vsel %vm351_vm2, %v861_v43, 0.0 }
  0x4e   : > { %401 = vrot.lane.b32.xlu1 %v863_v44, %s759_s27  ;;  %v352_v51 = vsel %vm350_vm1, %v863_v44, 0.0  ;;  %v361_v54 = vsel %vm302_vm0, %v353_v52, 0.0 }
  0x4f   : > { %v354_v53 = vsel %vm302_vm0, %v352_v51, 0.0  ;;  %v362_v56 = vrot.slane %v361_v54, 4 }
  0x50   : > { %v355_v55 = vrot.slane %v354_v53, 4 }
  0x51   : > { %v363_v58 = vadd.f32 %v362_v56, %v361_v54 }
  0x52   : > { %v356_v57 = vadd.f32 %v355_v55, %v354_v53 }
  0x53   : > { %v364_v60 = vrot.slane %v363_v58, 2 }
  0x54   : > { %v357_v59 = vrot.slane %v356_v57, 2 }
  0x55   : > { %420 = vperm.xlu0 %664, %v861_v43   ;;  %v365_v62 = vadd.f32 %v364_v60, %v363_v58 }
  0x56   : > { %415 = vperm.xlu1 %665, %v863_v44   ;;  %v358_v61 = vadd.f32 %v357_v59, %v356_v57  ;;  %v761_v59 = vmov 0.0  }
  0x57   : > { %v366_v0 = vrot.slane %v365_v62, 1  ;;  %297 = vst.msk [vmem:[%s291_s16] sm:$0x1] %vm296_vm8, %v761_v59 }
  0x58   : > { %v359_v63 = vrot.slane %v358_v61, 1 }
  0x59   : > { %v367_v2 = vadd.f32 %v366_v0, %v365_v62 }
  0x5a   : > { %v360_v1 = vadd.f32 %v359_v63, %v358_v61 }
  0x5b   : > { %v369_v4 = vsub.f32 0.0, %v367_v2 }
  0x5c   : > { %v368_v3 = vsub.f32 0.0, %v360_v1 }
  0x5d   : > { %471 = vrot.lane.b32.xlu0 %v863_v44, %s760_s9 }
  0x5e   : > { %v373_v5 = vsel %vm372_vm3, %v369_v4, %v368_v3  ;;  %v480_v4 = vld [vmem:[%s291_s16] sm:$0x1] }
  0x5f   : > { %v376_v6 = vsel %vm375_vm4, %v373_v5, 0.0 }
  0x60   : > { %377 = vadd.xlane.f32.xlu2 %v376_v6 }
  0xbf   : > { %v404_v7 = vpop.permute.xlu0 %403 }
  0xc0   : > { %v402_v8 = vpop.permute.xlu1 %401  ;;  %v409_v10 = vsel %vm407_vm5, %v861_v43, %v404_v7 }
  0xc1   : > { %v408_v12 = vsel %vm407_vm5, %v863_v44, %v402_v8 }
  0xc7   : > { %v421_v11 = vpop.permute.xlu0 %420 }
  0xc8   : > { %v424_v13 = vsel %vm412_vm6, %v421_v11, %v409_v10  ;;  %v416_v14 = vpop.permute.xlu1 %415 }
  0xc9   : > { %v426_v15 = vsub.f32 %v861_v43, %v424_v13  ;;  %v423_v16 = vsel %vm412_vm6, %v416_v14, %v408_v12 }
  0xca   : > { %v425_v17 = vsub.f32 %v863_v44, %v423_v16  ;;  %v459_v44 = vld [vmem:[%s926_s4] sm:$0x3] }
  0xcb   : > { %v428_v18 = vmul.f32 %v426_v15, %v426_v15 }
  0xcc   : > { %v427_v19 = vmul.f32 %v425_v17, %v425_v17 }
  0xcd   : > { %v430_v20 = vmin.f32 %v428_v18, 16.0 }
  0xce   : > { %v429_v21 = vmin.f32 %v427_v19, 16.0 }
  0xcf   : > { %v438_v22 = vsel %vm302_vm0, %v430_v20, 0.0  ;;  %v472_v2 = vpop.permute.xlu0 %471 }
  0xd0   : > { %v439_v23 = vrot.slane %v438_v22, 4  ;;  %v431_v24 = vsel %vm302_vm0, %v429_v21, 0.0 }
  0xd1   : > { %v432_v25 = vrot.slane %v431_v24, 4 }
  0xd2   : > { %v440_v26 = vadd.f32 %v439_v23, %v438_v22 }
  0xd3   : > { %v433_v27 = vadd.f32 %v432_v25, %v431_v24  ;;  %v378_v46 = vpop.xlane.xlu2 %377 }
  0xd4   : > { %v441_v28 = vrot.slane %v440_v26, 2  ;;  %v380_v47 = vmul.f32 %v379_v45, %v378_v46 }
  0xd5   : > { %v434_v29 = vrot.slane %v433_v27, 2 }
  0xd6   : > { %v442_v31 = vadd.f32 %v441_v28, %v440_v26  ;;  %v382_v48 = vsel %vm381_vm7, %v380_v47, 0.0 }
  0xd7   : > { %v435_v32 = vadd.f32 %v434_v29, %v433_v27  ;;  %383 = vadd.xlane.f32.xlu1 %v382_v48 }
  0xd8   : > { %v443_v33 = vrot.slane %v442_v31, 1 }
  0xd9   : > { %v436_v35 = vrot.slane %v435_v32, 1 }
  0xda   : > { %v444_v36 = vadd.f32 %v443_v33, %v442_v31 }
  0xdb   : > { %v437_v37 = vadd.f32 %v436_v35, %v435_v32 }
  0xdc   : > { %v450_v38 = vmul.f32 %v446_v34, %v444_v36 }
  0xdd   : > { %v449_v39 = vmul.f32 %v437_v37, %v301_v30 }
  0xde   : > { %v453_v40 = vrot.slane %v450_v38, 7 }
  0xe0   : > { %v454_v41 = vsel %vm372_vm3, %v453_v40, %v449_v39 }
  0xe1   : > { %v456_v42 = vsel %vm375_vm4, %v454_v41, 0.0 }
  0xe2   : > { %457 = vadd.xlane.f32.xlu2 %v456_v42 }
 0x14a   : > { %v384_v52 = vpop.xlane.xlu1 %383 }
 0x14b   : > { %v385_v53 = vrot.slane %v384_v52, 4 }
 0x14d   : > { %v386_v54 = vadd.f32 %v385_v53, %v384_v52 }
 0x14f   : > { %v387_v55 = vrot.slane %v386_v54, 2 }
 0x151   : > { %v388_v56 = vadd.f32 %v387_v55, %v386_v54 }
 0x153   : > { %v389_v57 = vrot.slane %v388_v56, 1 }
 0x155   : > { %v458_v49 = vpop.xlane.xlu2 %457  ;;  %v390_v58 = vadd.f32 %v389_v57, %v388_v56 }
 0x156   : > { %v460_v50 = vmul.f32 %v459_v44, %v458_v49 }
 0x157   : > { %599 = vpush %v390_v58 }
 0x158   : > { %v461_v51 = vsel %vm381_vm7, %v460_v50, 0.0 }
 0x159   : > { %462 = vadd.xlane.f32.xlu2 %v461_v51 }
 0x171   : > { %473 = vrot.lane.b32.xlu2 %v861_v43, %s760_s9 }
 0x188   : > { %s600_s17 = spop %599 }
 0x1cc   : > { %v463_v60 = vpop.xlane.xlu2 %462 }
 0x1cd   : > { %v464_v43 = vrot.slane %v463_v60, 4 }
 0x1cf   : > { %v465_v61 = vadd.f32 %v464_v43, %v463_v60 }
 0x1d1   : > { %v466_v62 = vrot.slane %v465_v61, 2 }
 0x1d3   : > { %v467_v63 = vadd.f32 %v466_v62, %v465_v61 }
 0x1d4   : > { %v474_v3 = vpop.permute.xlu2 %473 }
 0x1d5   : > { %v468_v0 = vrot.slane %v467_v63, 1 }
 0x1d7   : > { %v469_v1 = vadd.f32 %v468_v0, %v467_v63 }
 0x1d9   : > { %601 = vpush %v469_v1 }
 0x20a   : > { %s602_s18 = spop %601 }
 0x20b   : > { %s481_s24 = sadd.f32 %s602_s18, %s600_s17 }
 0x20d   : > { %v482_v5 = vstv %s481_s24 }
 0x20e   : > { %v483_v6 = vadd.f32 %v482_v5, %v480_v4 }
 0x210   : > { %485 = vst.msk [vmem:[%s291_s16] sm:$0x1] %vm296_vm8, %v483_v6 }
 0x211 PF: > { %s18_s23 = sadd.s32 1, %s754_s23   ;;  %s930_s18 = smov %s738_s19 }
 0x212   : > { %p15_p0 = scmp.ge.s32.totalorder %s18_s23, 4   ;;  %s931_s19 = smov %s742_s20 }
 0x213   : > { %s932_s20 = smov %s841_s30  ;;  %s933_s21 = smov %s750_s22 }
 0x214   : > { %s934_s22 = smov %s936_s25  ;;  %17 = sbr.rel (!%p15_p0) target bundleno = 4 (0x4), region = 90 }
 0x219   :  { %503 = vsyncpa [#allocation4], 1 }
 0x21a   :  { %505 = vsyncpa [#allocation4 + $0x1], 1 }

</bundles_post_ra>
